<compile_context>
chip_gen: v5e
topology: v5e:2x2
jax: 0.10.0
libtpu: 0.0.40
codegen_flags: <defaults>
</compile_context>

<pallas_src>
import functools

import jax
import jax.numpy as jnp
from jax.experimental import pallas as pl
from jax.experimental.pallas import tpu as pltpu

LANE = 128  # TPU lane width; feature dims padded to multiples of this.


def _round_up(x, m):
    return (x + m - 1) // m * m


def _pick_tile(n_pad, preferred):
    """Largest multiple of 128 <= preferred that divides n_pad."""
    t = max(min(preferred, n_pad), LANE)
    while n_pad % t != 0:
        t -= LANE
    return t


# ---------------------------------------------------------------------------
# Fused multi-layer GCN kernel
#   grid = (num_layers, row tiles of A_hat, contraction tiles of A_hat)
# ---------------------------------------------------------------------------
def fused_gcn_kernel(a_ref, x_ref, w_ref, b_ref, o_ref,
                     h_ref, z_ref, acc_ref,
                     *, num_layers, nclass, tm, tk):
    l = pl.program_id(0)          # layer index (sequential)
    i = pl.program_id(1)          # row tile of A_hat / output
    k = pl.program_id(2)          # contraction tile of A_hat
    n_k = pl.num_programs(2)

    first_step_of_layer = jnp.logical_and(i == 0, k == 0)

    # One-time init: stage the padded bf16 input features into the
    # VMEM-resident activation buffer.
    @pl.when(jnp.logical_and(l == 0, first_step_of_layer))
    def _():
        h_ref[...] = x_ref[...]

    # Once per layer: Z = H @ W for the whole graph (tiny vs A_hat),
    # kept VMEM-resident so the inner loop is a pure A_tile @ Z stream.
    @pl.when(first_step_of_layer)
    def _():
        z_ref[...] = jnp.dot(
            h_ref[...], w_ref[0],
            preferred_element_type=jnp.float32).astype(z_ref.dtype)

    # f32 accumulator over the contraction (k) axis.
    @pl.when(k == 0)
    def _():
        acc_ref[...] = jnp.zeros_like(acc_ref)

    k_off = pl.multiple_of(k * tk, tk)
    acc_ref[...] += jnp.dot(
        a_ref[...], z_ref[pl.ds(k_off, tk), :],
        preferred_element_type=jnp.float32)

    # Epilogue for this row tile: bias + activation.
    @pl.when(k == n_k - 1)
    def _():
        y = acc_ref[...] + b_ref[0]            # (tm, F_pad) + (1, F_pad)
        i_off = pl.multiple_of(i * tm, tm)
        last_layer = l == num_layers - 1

        @pl.when(jnp.logical_not(last_layer))
        def _():
            # ReLU; dropout is identity in eval mode.
            h_new = jnp.maximum(y, 0.0)
            # Next layer's input stays resident in VMEM (bf16).
            h_ref[pl.ds(i_off, tm), :] = h_new.astype(h_ref.dtype)
            # Defined (throwaway) data for the intermediate block writeback;
            # the final layer overwrites this output block.
            o_ref[...] = h_new.astype(o_ref.dtype)

        @pl.when(last_layer)
        def _():
            # Masked log_softmax: padded columns must not contribute exp(0).
            col = jax.lax.broadcasted_iota(jnp.int32, y.shape, 1)
            logits = jnp.where(col < nclass, y, -1e30)
            m = jnp.max(logits, axis=-1, keepdims=True)
            z = logits - m
            lse = jnp.log(jnp.sum(jnp.exp(z), axis=-1, keepdims=True))
            o_ref[...] = (z - lse).astype(o_ref.dtype)


# ---------------------------------------------------------------------------
# Wrapper: pad to lane-dense shapes, build the fused pallas_call
# ---------------------------------------------------------------------------
def _pad_inputs(x, a_hat, params):
    n, nfeat = x.shape
    dims = [nfeat] + [w.shape[1] for w, _ in params]
    f_pad = _round_up(max(dims), LANE)
    n_pad = _round_up(n, LANE)
    num_layers = len(params)

    x_pad = jnp.zeros((n_pad, f_pad), jnp.float32).at[:n, :nfeat].set(x)
    a_pad = jnp.zeros((n_pad, n_pad), jnp.float32).at[:n, :n].set(a_hat)

    w_stack = jnp.zeros((num_layers, f_pad, f_pad), jnp.float32)
    b_stack = jnp.zeros((num_layers, 1, f_pad), jnp.float32)
    for idx, (w, b) in enumerate(params):
        fi, fo = w.shape
        w_stack = w_stack.at[idx, :fi, :fo].set(w)
        b_stack = b_stack.at[idx, :, :fo].set(b.reshape(1, fo))

    return (x_pad.astype(jnp.bfloat16), a_pad.astype(jnp.bfloat16),
            w_stack.astype(jnp.bfloat16), b_stack, n_pad, f_pad)


def gcn_forward(x, a_hat, params, *, tm=256, tk=256):
    """Fused multi-layer GCN forward (eval mode) as a single pallas_call."""
    n = x.shape[0]
    nclass = params[-1][0].shape[1]
    num_layers = len(params)

    x_pad, a_pad, w_stack, b_stack, n_pad, f_pad = _pad_inputs(x, a_hat, params)

    # Tile A_hat.  Defaults are a middle ground; on v6e larger row tiles
    # (512-1024) amortize grid overhead further, on v5e/v7x keep tiles modest
    # to stay inside the smaller scoped-VMEM budgets.
    tm = _pick_tile(n_pad, tm)
    tk = _pick_tile(n_pad, tk)
    grid = (num_layers, n_pad // tm, n_pad // tk)

    kernel = functools.partial(
        fused_gcn_kernel, num_layers=num_layers, nclass=nclass, tm=tm, tk=tk)

    # Rough VMEM budget (double-buffered blocks + resident scratch), capped so
    # the request is legal on every generation (v7x physical VMEM = 64 MiB).
    block_bytes = (2 * tm * tk * 2            # A tiles (bf16, double-buffered)
                   + 2 * n_pad * f_pad * 2    # resident X
                   + 2 * f_pad * f_pad * 2    # W
                   + 2 * f_pad * 4            # b
                   + 2 * tm * f_pad * 4)      # output tile
    scratch_bytes = 2 * n_pad * f_pad * 2 + tm * f_pad * 4   # H, Z, acc
    vmem_limit = int(min(64 * 1024 * 1024,
                         max(32 * 1024 * 1024, 2 * (block_bytes + scratch_bytes))))

    out_pad = pl.pallas_call(
        kernel,
        out_shape=jax.ShapeDtypeStruct((n_pad, f_pad), jnp.float32),
        grid_spec=pltpu.PrefetchScalarGridSpec(
            num_scalar_prefetch=0,
            grid=grid,
            in_specs=[
                # A_hat tile (bf16)
                pl.BlockSpec((tm, tk), lambda l, i, k: (i, k)),
                # padded input features: one block, resident for whole kernel
                pl.BlockSpec((n_pad, f_pad), lambda l, i, k: (0, 0)),
                # per-layer weight / bias (re-DMA'd only when l changes)
                pl.BlockSpec((1, f_pad, f_pad), lambda l, i, k: (l, 0, 0)),
                pl.BlockSpec((1, 1, f_pad), lambda l, i, k: (l, 0, 0)),
            ],
            out_specs=pl.BlockSpec((tm, f_pad), lambda l, i, k: (i, 0)),
            scratch_shapes=[
                pltpu.VMEM((n_pad, f_pad), jnp.bfloat16),   # H (activations)
                pltpu.VMEM((n_pad, f_pad), jnp.bfloat16),   # Z = H @ W
                pltpu.VMEM((tm, f_pad), jnp.float32),       # f32 accumulator
            ]),
        compiler_params=pltpu.CompilerParams(
            # All axes "arbitrary": layer and row axes carry a dependency
            # through the VMEM-resident activation buffer (fused layers).
            dimension_semantics=("arbitrary", "arbitrary", "arbitrary"),
            vmem_limit_bytes=vmem_limit),
    )(a_pad, x_pad, w_stack, b_stack)

    return out_pad[:n, :nclass]


# ---------------------------------------------------------------------------
# Plain-JAX glue
# ---------------------------------------------------------------------------
def normalize_adjacency(adj):
    """GCN normalization: A_hat = D^-1/2 (A + I) D^-1/2 (dense)."""
    n = adj.shape[0]
    a = adj + jnp.eye(n, dtype=adj.dtype)
    deg = jnp.sum(a, axis=1)
    d_inv_sqrt = jnp.where(deg > 0, 1.0 / jnp.sqrt(deg), 0.0)
    return a * d_inv_sqrt[:, None] * d_inv_sqrt[None, :]


def init_gcn_params(key, nfeat, nhid, nclass, num_layers):
    """Glorot-style init matching GCNConv's [in, out] weights."""
    dims = [nfeat] + [nhid] * (num_layers - 1) + [nclass]
    params = []
    for i in range(num_layers):
        key, wk = jax.random.split(key)
        fan_in, fan_out = dims[i], dims[i + 1]
        scale = jnp.sqrt(6.0 / (fan_in + fan_out))
        w = jax.random.uniform(wk, (fan_in, fan_out), jnp.float32, -scale, scale)
        b = jnp.zeros((1, fan_out), jnp.float32)
        params.append((w, b))
    return params


# ---------------------------------------------------------------------------
# References
# ---------------------------------------------------------------------------
def gcn_forward_ref(x, a_hat, params):
    """Pure-JAX reference with the SAME bf16/f32 mixed precision as the kernel."""
    n = x.shape[0]
    nclass = params[-1][0].shape[1]
    x_pad, a_pad, w_stack, b_stack, _, _ = _pad_inputs(x, a_hat, params)
    num_layers = len(params)
    h = x_pad
    y = None
    for l in range(num_layers):
        z = jnp.dot(h, w_stack[l],
                    preferred_element_type=jnp.float32).astype(jnp.bfloat16)
        y = jnp.dot(a_pad, z, preferred_element_type=jnp.float32) + b_stack[l]
        if l < num_layers - 1:
            h = jnp.maximum(y, 0.0).astype(jnp.bfloat16)
    logits = y[:n, :nclass]
    return jax.nn.log_softmax(logits, axis=-1)


def gcn_forward_ref_f32(x, a_hat, params):
    """Pure f32 reference (semantic check, loose tolerance vs bf16 kernel)."""
    h = x
    for w, b in params[:-1]:
        h = jnp.maximum(a_hat @ (h @ w) + b, 0.0)
    w, b = params[-1]
    return jax.nn.log_softmax(a_hat @ (h @ w) + b, axis=-1)


if __name__ == "__main__":
    key = jax.random.PRNGKey(0)

    N = 16        # number of graph nodes
    NFEAT = 8     # input feature dim
    NHID = 32     # hidden dim
    NCLASS = 4    # output classes
    NUM_LAYERS = 3
    DROPOUT = 0.5  # identity in eval mode

    key, xk, ak, pk = jax.random.split(key, 4)

    x = jax.random.normal(xk, (N, NFEAT), dtype=jnp.float32)

    upper = (jax.random.uniform(ak, (N, N)) > 0.7).astype(jnp.float32)
    upper = jnp.triu(upper, k=1)
    adj = upper + upper.T

    params = init_gcn_params(pk, NFEAT, NHID, NCLASS, NUM_LAYERS)

    # GCNConv(cached=True): normalize once, reuse across forward calls.
    a_hat = normalize_adjacency(adj)

    fwd = jax.jit(gcn_forward)
    out = jax.block_until_ready(fwd(x, a_hat, params))

    ref = gcn_forward_ref(x, a_hat, params)
    ref_f32 = gcn_forward_ref_f32(x, a_hat, params)

    assert out.shape == (N, NCLASS)
    assert jnp.allclose(out, ref, atol=1e-2, rtol=1e-2), "mismatch vs bf16 reference"
    assert jnp.allclose(out, ref_f32, atol=1e-1, rtol=1e-1), "mismatch vs f32 reference"
    # log_softmax rows should sum (in prob space) to ~1
    assert jnp.allclose(jnp.sum(jnp.exp(out), axis=-1), 1.0, atol=1e-3)

    print("KERNEL_OK")
</pallas_src>

<mosaic_0001>
module attributes {stable_mosaic.version = 11 : i64} {
  func.func @fused_gcn_kernel(%arg0: i32, %arg1: i32, %arg2: i32, %arg3: memref<128x128xbf16, #tpu.memory_space<vmem>>, %arg4: memref<128x128xbf16, #tpu.memory_space<vmem>>, %arg5: memref<1x128x128xbf16, #tpu.memory_space<vmem>>, %arg6: memref<1x1x128xf32, #tpu.memory_space<vmem>>, %arg7: memref<128x128xf32, #tpu.memory_space<vmem>>, %arg8: memref<128x128xbf16, #tpu.memory_space<vmem>>, %arg9: memref<128x128xbf16, #tpu.memory_space<vmem>>, %arg10: memref<128x128xf32, #tpu.memory_space<vmem>>) attributes {dimension_semantics = [#tpu.dimension_semantics<arbitrary>, #tpu.dimension_semantics<arbitrary>, #tpu.dimension_semantics<arbitrary>], iteration_bounds = array<i64: 3, 1, 1>, scalar_prefetch = 0 : i64, scratch_operands = 3 : i64, tpu.core_type = #tpu.core_type<tc>, window_params = [{transform_indices = @transform_0, window_bounds = array<i64: 128, 128>}, {pipeline_mode = #tpu.pipeline_mode<synchronous>, transform_indices = @transform_1, window_bounds = array<i64: 128, 128>}, {transform_indices = @transform_2, window_bounds = array<i64: 1, 128, 128>}, {transform_indices = @transform_3, window_bounds = array<i64: 1, 1, 128>}, {transform_indices = @transform_4, window_bounds = array<i64: 128, 128>}]} {
    %c0_i32 = arith.constant 0 : i32
    %0 = arith.cmpi eq, %arg1, %c0_i32 : i32
    %c0_i32_0 = arith.constant 0 : i32
    %1 = arith.cmpi eq, %arg2, %c0_i32_0 : i32
    %2 = arith.andi %0, %1 : i1
    %c0_i32_1 = arith.constant 0 : i32
    %3 = arith.cmpi eq, %arg0, %c0_i32_1 : i32
    %4 = arith.andi %3, %2 : i1
    %5 = arith.extui %4 : i1 to i32
    %c0_i32_2 = arith.constant 0 : i32
    %6 = arith.cmpi ne, %5, %c0_i32_2 : i32
    scf.if %6 {
      %c0_14 = arith.constant 0 : index
      %c0_15 = arith.constant 0 : index
      %24 = vector.load %arg4[%c0_14, %c0_15] : memref<128x128xbf16, #tpu.memory_space<vmem>>, vector<128x128xbf16>
      %c0_16 = arith.constant 0 : index
      %c0_17 = arith.constant 0 : index
      %25 = vector.load %arg8[%c0_16, %c0_17] : memref<128x128xbf16, #tpu.memory_space<vmem>>, vector<128x128xbf16>
      tpu.vector_store %arg8[%c0_16, %c0_17], %24 {strides = array<i32>} : memref<128x128xbf16, #tpu.memory_space<vmem>>, vector<128x128xbf16>,
    } else {
    }
    %7 = arith.extui %2 : i1 to i32
    %c0_i32_3 = arith.constant 0 : i32
    %8 = arith.cmpi ne, %7, %c0_i32_3 : i32
    scf.if %8 {
      %c0_14 = arith.constant 0 : index
      %c0_15 = arith.constant 0 : index
      %24 = vector.load %arg8[%c0_14, %c0_15] : memref<128x128xbf16, #tpu.memory_space<vmem>>, vector<128x128xbf16>
      %c0_16 = arith.constant 0 : index
      %c0_17 = arith.constant 0 : index
      %c0_18 = arith.constant 0 : index
      %25 = vector.load %arg5[%c0_16, %c0_17, %c0_18] : memref<1x128x128xbf16, #tpu.memory_space<vmem>>, vector<1x128x128xbf16>
      %26 = vector.shape_cast %25 : vector<1x128x128xbf16> to vector<128x128xbf16>
      %cst_19 = arith.constant dense<0.000000e+00> : vector<128x128xf32>
      %27 = tpu.matmul %24, %26, %cst_19 {dimension_numbers = #tpu.dot_dimension_numbers<[1], [0], [0], [1], [0, 0, 1, 1], [], []>} : vector<128x128xbf16>, vector<128x128xbf16>, vector<128x128xf32> -> vector<128x128xf32>
      %28 = arith.truncf %27 : vector<128x128xf32> to vector<128x128xbf16>
      %c0_20 = arith.constant 0 : index
      %c0_21 = arith.constant 0 : index
      %29 = vector.load %arg9[%c0_20, %c0_21] : memref<128x128xbf16, #tpu.memory_space<vmem>>, vector<128x128xbf16>
      tpu.vector_store %arg9[%c0_20, %c0_21], %28 {strides = array<i32>} : memref<128x128xbf16, #tpu.memory_space<vmem>>, vector<128x128xbf16>,
    } else {
    }
    %c0_i32_4 = arith.constant 0 : i32
    %9 = arith.cmpi eq, %arg2, %c0_i32_4 : i32
    %10 = arith.extui %9 : i1 to i32
    %c0_i32_5 = arith.constant 0 : i32
    %11 = arith.cmpi ne, %10, %c0_i32_5 : i32
    scf.if %11 {
      %cst_14 = arith.constant 0.000000e+00 : f32
      %24 = vector.broadcast %cst_14 : f32 to vector<128x128xf32>
      %c0_15 = arith.constant 0 : index
      %c0_16 = arith.constant 0 : index
      %25 = vector.load %arg10[%c0_15, %c0_16] : memref<128x128xf32, #tpu.memory_space<vmem>>, vector<128x128xf32>
      tpu.vector_store %arg10[%c0_15, %c0_16], %24 {strides = array<i32>} : memref<128x128xf32, #tpu.memory_space<vmem>>, vector<128x128xf32>,
    } else {
    }
    %c128_i32 = arith.constant 128 : i32
    %12 = arith.muli %arg2, %c128_i32 : i32
    %13 = tpu.assume_multiple %12, 128 : i32
    %c0 = arith.constant 0 : index
    %c0_6 = arith.constant 0 : index
    %14 = vector.load %arg10[%c0, %c0_6] : memref<128x128xf32, #tpu.memory_space<vmem>>, vector<128x128xf32>
    %c0_7 = arith.constant 0 : index
    %c0_8 = arith.constant 0 : index
    %15 = vector.load %arg3[%c0_7, %c0_8] : memref<128x128xbf16, #tpu.memory_space<vmem>>, vector<128x128xbf16>
    %16 = arith.index_cast %13 : i32 to index
    %c0_9 = arith.constant 0 : index
    %17 = vector.load %arg9[%16, %c0_9] : memref<128x128xbf16, #tpu.memory_space<vmem>>, vector<128x128xbf16>
    %cst = arith.constant dense<0.000000e+00> : vector<128x128xf32>
    %18 = tpu.matmul %15, %17, %cst {dimension_numbers = #tpu.dot_dimension_numbers<[1], [0], [0], [1], [0, 0, 1, 1], [], []>} : vector<128x128xbf16>, vector<128x128xbf16>, vector<128x128xf32> -> vector<128x128xf32>
    %19 = arith.addf %14, %18 : vector<128x128xf32>
    %c0_10 = arith.constant 0 : index
    %c0_11 = arith.constant 0 : index
    %20 = vector.load %arg10[%c0_10, %c0_11] : memref<128x128xf32, #tpu.memory_space<vmem>>, vector<128x128xf32>
    tpu.vector_store %arg10[%c0_10, %c0_11], %19 {strides = array<i32>} : memref<128x128xf32, #tpu.memory_space<vmem>>, vector<128x128xf32>,
    %c0_i32_12 = arith.constant 0 : i32
    %21 = arith.cmpi eq, %arg2, %c0_i32_12 : i32
    %22 = arith.extui %21 : i1 to i32
    %c0_i32_13 = arith.constant 0 : i32
    %23 = arith.cmpi ne, %22, %c0_i32_13 : i32
    scf.if %23 {
      %c0_14 = arith.constant 0 : index
      %c0_15 = arith.constant 0 : index
      %24 = vector.load %arg10[%c0_14, %c0_15] : memref<128x128xf32, #tpu.memory_space<vmem>>, vector<128x128xf32>
      %c0_16 = arith.constant 0 : index
      %c0_17 = arith.constant 0 : index
      %c0_18 = arith.constant 0 : index
      %25 = vector.load %arg6[%c0_16, %c0_17, %c0_18] : memref<1x1x128xf32, #tpu.memory_space<vmem>>, vector<1x1x128xf32>
      %26 = vector.shape_cast %25 : vector<1x1x128xf32> to vector<1x128xf32>
      %27 = vector.broadcast %26 : vector<1x128xf32> to vector<128x128xf32>
      %28 = arith.addf %24, %27 : vector<128x128xf32>
      %c128_i32_19 = arith.constant 128 : i32
      %29 = arith.muli %arg1, %c128_i32_19 : i32
      %30 = tpu.assume_multiple %29, 128 : i32
      %c2_i32 = arith.constant 2 : i32
      %31 = arith.cmpi eq, %arg0, %c2_i32 : i32
      %true = arith.constant true
      %32 = arith.xori %31, %true : i1
      %33 = arith.extui %32 : i1 to i32
      %c0_i32_20 = arith.constant 0 : i32
      %34 = arith.cmpi ne, %33, %c0_i32_20 : i32
      scf.if %34 {
        %cst_22 = arith.constant 0.000000e+00 : f32
        %37 = vector.broadcast %cst_22 : f32 to vector<128x128xf32>
        %38 = arith.maximumf %28, %37 : vector<128x128xf32>
        %39 = arith.truncf %38 : vector<128x128xf32> to vector<128x128xbf16>
        %40 = arith.index_cast %30 : i32 to index
        %c0_23 = arith.constant 0 : index
        %41 = vector.load %arg8[%40, %c0_23] : memref<128x128xbf16, #tpu.memory_space<vmem>>, vector<128x128xbf16>
        tpu.vector_store %arg8[%40, %c0_23], %39 {strides = array<i32>} : memref<128x128xbf16, #tpu.memory_space<vmem>>, vector<128x128xbf16>,
        %c0_24 = arith.constant 0 : index
        %c0_25 = arith.constant 0 : index
        %42 = vector.load %arg7[%c0_24, %c0_25] : memref<128x128xf32, #tpu.memory_space<vmem>>, vector<128x128xf32>
        tpu.vector_store %arg7[%c0_24, %c0_25], %38 {strides = array<i32>} : memref<128x128xf32, #tpu.memory_space<vmem>>, vector<128x128xf32>,
      } else {
      }
      %35 = arith.extui %31 : i1 to i32
      %c0_i32_21 = arith.constant 0 : i32
      %36 = arith.cmpi ne, %35, %c0_i32_21 : i32
      scf.if %36 {
        %37 = tpu.iota {dimensions = array<i32: 1>} : vector<128x128xi32>
        %c4_i32 = arith.constant 4 : i32
        %38 = vector.broadcast %c4_i32 : i32 to vector<128x128xi32>
        %39 = arith.cmpi slt, %37, %38 : vector<128x128xi32>
        %cst_22 = arith.constant -1.000000e+30 : f32
        %40 = vector.broadcast %cst_22 : f32 to vector<128x128xf32>
        %41 = arith.select %39, %28, %40 : vector<128x128xi1>, vector<128x128xf32>
        %cst_23 = arith.constant dense<0xFF800000> : vector<128xf32>
        %42 = vector.multi_reduction <maximumf>, %41, %cst_23 [1] : vector<128x128xf32> to vector<128xf32>
        %43 = vector.shape_cast %42 : vector<128xf32> to vector<128x1xf32>
        %44 = vector.broadcast %43 : vector<128x1xf32> to vector<128x128xf32>
        %45 = arith.subf %41, %44 : vector<128x128xf32>
        %46 = math.exp %45 : vector<128x128xf32>
        %cst_24 = arith.constant dense<0.000000e+00> : vector<128xf32>
        %47 = vector.multi_reduction <add>, %46, %cst_24 [1] : vector<128x128xf32> to vector<128xf32>
        %48 = vector.shape_cast %47 : vector<128xf32> to vector<128x1xf32>
        %49 = math.log %48 : vector<128x1xf32>
        %50 = vector.broadcast %49 : vector<128x1xf32> to vector<128x128xf32>
        %51 = arith.subf %45, %50 : vector<128x128xf32>
        %c0_25 = arith.constant 0 : index
        %c0_26 = arith.constant 0 : index
        %52 = vector.load %arg7[%c0_25, %c0_26] : memref<128x128xf32, #tpu.memory_space<vmem>>, vector<128x128xf32>
        tpu.vector_store %arg7[%c0_25, %c0_26], %51 {strides = array<i32>} : memref<128x128xf32, #tpu.memory_space<vmem>>, vector<128x128xf32>,
      } else {
      }
    } else {
    }
    return
  }
  func.func @transform_0(%arg0: i32, %arg1: i32, %arg2: i32) -> (i32, i32) {
    %c0_i32 = arith.constant 0 : i32
    return %arg1, %arg2 : i32, i32
  }
  func.func @transform_1(%arg0: i32, %arg1: i32, %arg2: i32) -> (i32, i32) {
    %c0_i32 = arith.constant 0 : i32
    %c0_i32_0 = arith.constant 0 : i32
    %c0_i32_1 = arith.constant 0 : i32
    return %c0_i32, %c0_i32_0 : i32, i32
  }
  func.func @transform_2(%arg0: i32, %arg1: i32, %arg2: i32) -> (i32, i32, i32) {
    %c0_i32 = arith.constant 0 : i32
    %c0_i32_0 = arith.constant 0 : i32
    %c0_i32_1 = arith.constant 0 : i32
    return %arg0, %c0_i32, %c0_i32_0 : i32, i32, i32
  }
  func.func @transform_3(%arg0: i32, %arg1: i32, %arg2: i32) -> (i32, i32, i32) {
    %c0_i32 = arith.constant 0 : i32
    %c0_i32_0 = arith.constant 0 : i32
    %c0_i32_1 = arith.constant 0 : i32
    return %arg0, %c0_i32, %c0_i32_0 : i32, i32, i32
  }
  func.func @transform_4(%arg0: i32, %arg1: i32, %arg2: i32) -> (i32, i32) {
    %c0_i32 = arith.constant 0 : i32
    %c0_i32_0 = arith.constant 0 : i32
    return %arg1, %c0_i32 : i32, i32
  }
}

</mosaic_0001>

<bundles_post_ra>
// kernel: gcn_forward.1
= control target key start
LH: loop header
LB: loop body
LE: loop exit
PB: predicated region body
PF: predicated region fallthrough
CT: control target
= control target key end

     0   :  { %s1597_s15 = smov 0   ;;  %s1599_s16 = smov 0   ;;  %s1964_s0 = inlined_call_operand.vmem [shape: bf16[128,128], index: 0, kind: input, shape index: {}]   ;;  %s1965_s1 = inlined_call_operand.vmem [shape: bf16[128,128], index: 1, kind: input, shape index: {}]   ;;  %s1966_s2 = inlined_call_operand.vmem [shape: bf16[3,128,128], index: 2, kind: input, shape index: {}]   ;;  %s1967_s3 = inlined_call_operand.vmem [shape: f32[3,1,128], index: 3, kind: input, shape index: {}]   ;;  %s1968_s4 = inlined_call_operand.vmem [shape: f32[128,128], index: 4, kind: output, shape index: {}]  }
   0x1   :  { %s1601_s17 = smov 0  }
   0x2 LB: > { %s33_s18 = sadd.s32 1, %s1566_s16  ;;  %p1177_p0 = scmp.ge.s32.totalorder %s1570_s17, 1  ;;  %s1570_s17 = sphi %s1601_s17, %s14_s17   ;;  %s1566_s16 = sphi %s1599_s16, %s1970_s16   ;;  %s1562_s15 = sphi %s1597_s15, %s1969_s15  }
   0x3   : > { %p35_p1 = scmp.ge.s32.totalorder %s33_s18, 3  ;;  %p205_p2 = scmp.lt.s32.totalorder %s1570_s17, 4 }
   0x5   : > { %s1972_s18 = smov (%p35_p1, %s33_s18), 0  ;;  %p206_p3 = pnand %p1177_p0, %p205_p2 }
   0x6   : > { %p251_p4 = scmp.lt.s32.totalorder (!%p206_p3), %s1562_s15, 2  ;;  %p269_p5 = scmp.eq.s32.totalorder (!%p206_p3), %s1562_s15, 0 }
   0x7   : > { %209 = sbr.rel (%p206_p3) target bundleno = 808 (0x328), region = 36 }
   0xc   : > { %s1620_s19 = scalar_select %p251_p4, %s1562_s15, 2  ;;  %v274_v0 = vld [vmem:[%s1965_s1] sm:$0xff] (%p269_p5)   ;;  %v276_v1 = vld [vmem:[%s1965_s1 + $0x8] sm:$0xff] (%p269_p5)   ;;  %v278_v2 = vld [vmem:[%s1965_s1 + $0x10] sm:$0xff] (%p269_p5)  }
   0xd   : > { %273 = sbr.rel (!%p269_p5) target bundleno = 21 (0x15), region = 40  ;;  %290 = vst [vmem:[#allocation2] sm:$0xff] (%p269_p5), %v274_v0   ;;  %v280_v3 = vld [vmem:[%s1965_s1 + $0x18] sm:$0xff] (%p269_p5)   ;;  %v282_v4 = vld [vmem:[%s1965_s1 + $0x20] sm:$0xff] (%p269_p5)   ;;  %v284_v5 = vld [vmem:[%s1965_s1 + $0x28] sm:$0xff] (%p269_p5)  }
   0xe   : > { %s1315_s20 = sshll.u32 %s1620_s19, 6  ;;  %s258_s23 = scalar_lea.vmem %s1967_s3, %s1620_s19  ;;  %292 = vst [vmem:[#allocation2 + $0x8] sm:$0xff] (%p269_p5), %v276_v1   ;;  %v286_v6 = vld [vmem:[%s1965_s1 + $0x30] sm:$0xff] (%p269_p5)   ;;  %v288_v7 = vld [vmem:[%s1965_s1 + $0x38] sm:$0xff] (%p269_p5)  }
   0xf   : > { %s1630_s26 = scalar_lea.vmem %s1966_s2, %s1315_s20  ;;  %294 = vst [vmem:[#allocation2 + $0x10] sm:$0xff] (%p269_p5), %v278_v2  }
  0x10   : > { %296 = vst [vmem:[#allocation2 + $0x18] sm:$0xff] (%p269_p5), %v280_v3  }
  0x11   : > { %298 = vst [vmem:[#allocation2 + $0x20] sm:$0xff] (%p269_p5), %v282_v4  }
  0x12   : > { %300 = vst [vmem:[#allocation2 + $0x28] sm:$0xff] %v284_v5  }
  0x13   : > { %302 = vst [vmem:[#allocation2 + $0x30] sm:$0xff] %v286_v6  }
  0x14   : > { %304 = vst [vmem:[#allocation2 + $0x38] sm:$0xff] %v288_v7  }
  0x15 PF: > { %v1332_v8 = vld [vmem:[%s1630_s26 + $0x38] sm:$0xff]  ;;  %v1331_v9 = vld [vmem:[%s1630_s26 + $0x30] sm:$0xff]  ;;  %v1330_v10 = vld [vmem:[%s1630_s26 + $0x28] sm:$0xff]  ;;  %p1309_p6 = scmp.eq.s32.totalorder %s1562_s15, 2 }
  0x16   : > { %1443 = vmatpush.bf16.msra.mxu2 %v1332_v8  ;;  %436 = vmatpush.bf16.msra.mxu0 %v1332_v8  ;;  %v1329_v11 = vld [vmem:[%s1630_s26 + $0x20] sm:$0xff]  ;;  %v1328_v12 = vld [vmem:[%s1630_s26 + $0x18] sm:$0xff]  ;;  %v1327_v13 = vld [vmem:[%s1630_s26 + $0x10] sm:$0xff] }
  0x17   : > { %v1326_v14 = vld [vmem:[%s1630_s26 + $0x8] sm:$0xff]  ;;  %v1325_v15 = vld [vmem:[%s1630_s26] sm:$0xff]  ;;  %v1335_v60 = vld [vmem:[%s1964_s0 + $0x10] sm:$0xff] }
  0x18   : > { %v1317_v17 = vld [vmem:[#allocation2] sm:$0xff]  ;;  %v1318_v19 = vld [vmem:[#allocation2 + $0x8] sm:$0xff]  ;;  %v1339_v61 = vld [vmem:[%s1964_s0 + $0x30] sm:$0xff] }
  0x19   : > { %v1319_v21 = vld [vmem:[#allocation2 + $0x10] sm:$0xff]  ;;  %v1333_v56 = vld [vmem:[%s1964_s0] sm:$0xff]  ;;  %v1334_v58 = vld [vmem:[%s1964_s0 + $0x8] sm:$0xff] }
  0x1a   : > { %1444 = vmatpush.bf16.msra.mxu2 %v1331_v9  ;;  %437 = vmatpush.bf16.msra.mxu0 %v1331_v9  ;;  %v1323_v20 = vld [vmem:[#allocation2 + $0x30] sm:$0xff]  ;;  %v1320_v23 = vld [vmem:[#allocation2 + $0x18] sm:$0xff]  ;;  %v1337_v57 = vld [vmem:[%s1964_s0 + $0x20] sm:$0xff] }
  0x1b   : > { %v1321_v16 = vld [vmem:[#allocation2 + $0x20] sm:$0xff]  ;;  %v1324_v22 = vld [vmem:[#allocation2 + $0x38] sm:$0xff]  ;;  %v1338_v59 = vld [vmem:[%s1964_s0 + $0x28] sm:$0xff] }
  0x1c   : > { %v1322_v18 = vld [vmem:[#allocation2 + $0x28] sm:$0xff]  ;;  %v1336_v62 = vld [vmem:[%s1964_s0 + $0x18] sm:$0xff]  ;;  %v1483_v0 = vld [vmem:[%s258_s23] ss:$0 sm:$0xff] }
  0x1d   : > { %v1340_v63 = vld [vmem:[%s1964_s0 + $0x38] sm:$0xff] }
  0x1e   : > { %1445 = vmatpush.bf16.msra.mxu2 %v1330_v10  ;;  %438 = vmatpush.bf16.msra.mxu0 %v1330_v10 }
  0x22   : > { %1446 = vmatpush.bf16.msra.mxu2 %v1329_v11  ;;  %439 = vmatpush.bf16.msra.mxu0 %v1329_v11 }
  0x26   : > { %1447 = vmatpush.bf16.msra.mxu2 %v1328_v12  ;;  %440 = vmatpush.bf16.msra.mxu0 %v1328_v12 }
  0x2a   : > { %1448 = vmatpush.bf16.msra.mxu2 %v1327_v13  ;;  %441 = vmatpush.bf16.msra.mxu0 %v1327_v13 }
  0x2e   : > { %1449 = vmatpush.bf16.msra.mxu2 %v1326_v14  ;;  %442 = vmatpush.bf16.msra.mxu0 %v1326_v14 }
  0x32   : > { %1450 = vmatpush.bf16.msra.mxu2 %v1325_v15  ;;  %443 = vmatpush.bf16.msra.mxu0 %v1325_v15 }
  0x35   : > { %464 = vmatmul.bf16.vlgmr.msra.gmra.mxu2 %v1321_v16  ;;  %444 = vmatmul.bf16.vlgmr.msra.gmra.mxu0 %v1317_v17 }
  0x45   : > { %469 = vmatmul.bf16.gmra.mxu2 %v1322_v18  ;;  %449 = vmatmul.bf16.gmra.mxu0 %v1318_v19 }
  0x55   : > { %474 = vmatmul.bf16.gmra.mxu2 %v1323_v20  ;;  %454 = vmatmul.bf16.gmra.mxu0 %v1319_v21 }
  0x65   : > { %479 = vmatmul.bf16.gmra.mxu2 %v1324_v22  ;;  %459 = vmatmul.bf16.gmra.mxu0 %v1320_v23 }
  0xb2   : > { %v445_v24 = vpop.f32.mrf.mxu0 }
  0xb8   : > { %v465_v25 = vpop.f32.mrf.mxu2 }
  0xba   : > { %v447_v26 = vpop.f32.mrf.mxu0 }
  0xbb   : > { %v1352_v27 = vpack.c.bf16 %v447_v26, %v445_v24 }
  0xbd   : > { %1353 = vst [vmem:[#allocation3 + $0x30] sm:$0xff] %v1352_v27  }
  0xc0   : > { %v467_v28 = vpop.f32.mrf.mxu2 }
  0xc1   : > { %v1372_v29 = vpack.c.bf16 %v467_v28, %v465_v25 }
  0xc2   : > { %v450_v30 = vpop.f32.mrf.mxu0 }
  0xc3   : > { %1432 = vst [vmem:[#allocation3 + $0x8] sm:$0xff] %v1372_v29  }
  0xc4   : > { %v1341_v55 = vld [vmem:[#allocation3 + $0x30] sm:$0xff] }
  0xc8   : > { %v470_v31 = vpop.f32.mrf.mxu2 }
  0xca   : > { %v452_v32 = vpop.f32.mrf.mxu0  ;;  %v1345_v51 = vld [vmem:[#allocation3 + $0x8] sm:$0xff] }
  0xcb   : > { %v1357_v33 = vpack.c.bf16 %v452_v32, %v450_v30 }
  0xcd   : > { %1429 = vst [vmem:[#allocation3] sm:$0xff] %v1357_v33  }
  0xd0   : > { %v472_v34 = vpop.f32.mrf.mxu2 }
  0xd1   : > { %v1377_v35 = vpack.c.bf16 %v472_v34, %v470_v31 }
  0xd2   : > { %v455_v36 = vpop.f32.mrf.mxu0 }
  0xd3   : > { %1433 = vst [vmem:[#allocation3 + $0x20] sm:$0xff] %v1377_v35  }
  0xd4   : > { %v1342_v54 = vld [vmem:[#allocation3] sm:$0xff] }
  0xd8   : > { %v475_v37 = vpop.f32.mrf.mxu2 }
  0xda   : > { %v457_v38 = vpop.f32.mrf.mxu0  ;;  %v1346_v50 = vld [vmem:[#allocation3 + $0x20] sm:$0xff] }
  0xdb   : > { %v1362_v39 = vpack.c.bf16 %v457_v38, %v455_v36 }
  0xdd   : > { %1430 = vst [vmem:[#allocation3 + $0x18] sm:$0xff] %v1362_v39  }
  0xe0   : > { %v477_v40 = vpop.f32.mrf.mxu2 }
  0xe1   : > { %v1382_v41 = vpack.c.bf16 %v477_v40, %v475_v37 }
  0xe2   : > { %v460_v42 = vpop.f32.mrf.mxu0 }
  0xe3   : > { %1434 = vst [vmem:[#allocation3 + $0x28] sm:$0xff] %v1382_v41  }
  0xe4   : > { %v1343_v53 = vld [vmem:[#allocation3 + $0x18] sm:$0xff] }
  0xe8   : > { %v480_v43 = vpop.f32.mrf.mxu2 }
  0xea   : > { %v462_v44 = vpop.f32.mrf.mxu0  ;;  %v1347_v49 = vld [vmem:[#allocation3 + $0x28] sm:$0xff] }
  0xeb   : > { %v1367_v45 = vpack.c.bf16 %v462_v44, %v460_v42 }
  0xed   : > { %1431 = vst [vmem:[#allocation3 + $0x10] sm:$0xff] %v1367_v45  }
  0xf0   : > { %v482_v46 = vpop.f32.mrf.mxu2 }
  0xf1   : > { %v1387_v47 = vpack.c.bf16 %v482_v46, %v480_v43 }
  0xf3   : > { %1435 = vst [vmem:[#allocation3 + $0x38] sm:$0xff] %v1387_v47  }
  0xf4   : > { %v1344_v52 = vld [vmem:[#allocation3 + $0x10] sm:$0xff] }
  0xfa   : > { %v1348_v48 = vld [vmem:[#allocation3 + $0x38] sm:$0xff] }
  0xfb   : > { %685 = vmatpush.bf16.msra.mxu1 %v1348_v48  ;;  %1451 = vmatpush.bf16.msra.mxu3 %v1348_v48 }
  0xff   : > { %686 = vmatpush.bf16.msra.mxu1 %v1347_v49  ;;  %1452 = vmatpush.bf16.msra.mxu3 %v1347_v49 }
 0x103   : > { %687 = vmatpush.bf16.msra.mxu1 %v1346_v50  ;;  %1453 = vmatpush.bf16.msra.mxu3 %v1346_v50 }
 0x107   : > { %688 = vmatpush.bf16.msra.mxu1 %v1345_v51  ;;  %1454 = vmatpush.bf16.msra.mxu3 %v1345_v51 }
 0x10b   : > { %689 = vmatpush.bf16.msra.mxu1 %v1344_v52  ;;  %1455 = vmatpush.bf16.msra.mxu3 %v1344_v52 }
 0x10f   : > { %690 = vmatpush.bf16.msra.mxu1 %v1343_v53  ;;  %1456 = vmatpush.bf16.msra.mxu3 %v1343_v53 }
 0x113   : > { %691 = vmatpush.bf16.msra.mxu1 %v1342_v54  ;;  %1457 = vmatpush.bf16.msra.mxu3 %v1342_v54 }
 0x117   : > { %692 = vmatpush.bf16.msra.mxu1 %v1341_v55  ;;  %1458 = vmatpush.bf16.msra.mxu3 %v1341_v55 }
 0x11a   : > { %693 = vmatmul.bf16.vlgmr.msra.gmra.mxu1 %v1333_v56  ;;  %713 = vmatmul.bf16.vlgmr.msra.gmra.mxu3 %v1337_v57 }
 0x12a   : > { %698 = vmatmul.bf16.gmra.mxu1 %v1334_v58  ;;  %718 = vmatmul.bf16.gmra.mxu3 %v1338_v59 }
 0x13a   : > { %703 = vmatmul.bf16.gmra.mxu1 %v1335_v60  ;;  %723 = vmatmul.bf16.gmra.mxu3 %v1339_v61 }
 0x14a   : > { %708 = vmatmul.bf16.gmra.mxu1 %v1336_v62  ;;  %728 = vmatmul.bf16.gmra.mxu3 %v1340_v63 }
 0x197   : > { %v694_v1 = vpop.f32.mrf.mxu1 }
 0x198   : > { %v1693_v2 = vadd.f32 %v1483_v0, %v694_v1 }
 0x19d   : > { %v714_v3 = vpop.f32.mrf.mxu3 }
 0x19e   : > { %v1695_v4 = vadd.f32 %v1483_v0, %v714_v3 }
 0x19f   : > { %v696_v5 = vpop.f32.mrf.mxu1 }
 0x1a0   : > { %v1697_v6 = vadd.f32 %v1483_v0, %v696_v5 }
 0x1a5   : > { %v716_v7 = vpop.f32.mrf.mxu3 }
 0x1a6   : > { %v1699_v8 = vadd.f32 %v1483_v0, %v716_v7 }
 0x1a7   : > { %v699_v9 = vpop.f32.mrf.mxu1 }
 0x1a8   : > { %v1701_v10 = vadd.f32 %v1483_v0, %v699_v9 }
 0x1ad   : > { %v719_v11 = vpop.f32.mrf.mxu3 }
 0x1ae   : > { %v1703_v12 = vadd.f32 %v1483_v0, %v719_v11 }
 0x1af   : > { %v701_v13 = vpop.f32.mrf.mxu1 }
 0x1b0   : > { %v1705_v14 = vadd.f32 %v1483_v0, %v701_v13 }
 0x1b5   : > { %v721_v15 = vpop.f32.mrf.mxu3 }
 0x1b6   : > { %v1707_v16 = vadd.f32 %v1483_v0, %v721_v15 }
 0x1b7   : > { %v704_v17 = vpop.f32.mrf.mxu1 }
 0x1b8   : > { %v1709_v18 = vadd.f32 %v1483_v0, %v704_v17 }
 0x1bd   : > { %v724_v19 = vpop.f32.mrf.mxu3 }
 0x1be   : > { %v1711_v20 = vadd.f32 %v1483_v0, %v724_v19 }
 0x1bf   : > { %v706_v21 = vpop.f32.mrf.mxu1 }
 0x1c0   : > { %v1713_v22 = vadd.f32 %v1483_v0, %v706_v21 }
 0x1c5   : > { %v726_v23 = vpop.f32.mrf.mxu3 }
 0x1c6   : > { %v1715_v24 = vadd.f32 %v1483_v0, %v726_v23 }
 0x1c7   : > { %v709_v25 = vpop.f32.mrf.mxu1 }
 0x1c8   : > { %v1717_v26 = vadd.f32 %v1483_v0, %v709_v25 }
 0x1cd   : > { %v729_v27 = vpop.f32.mrf.mxu3 }
 0x1ce   : > { %v1719_v28 = vadd.f32 %v1483_v0, %v729_v27 }
 0x1cf   : > { %v711_v29 = vpop.f32.mrf.mxu1 }
 0x1d0   : > { %v1721_v30 = vadd.f32 %v1483_v0, %v711_v29 }
 0x1d2   : > { %810 = sbr.rel (%p1309_p6) target bundleno = 497 (0x1f1), region = 56 }
 0x1d5   : > { %v731_v31 = vpop.f32.mrf.mxu3 }
 0x1d6   : > { %v1723_v32 = vadd.f32 %v1483_v0, %v731_v31 }
 0x1d7   : > { %v811_v33 = vmax.f32 %v1693_v2, 0.0  ;;  %v812_v34 = vmax.f32 %v1697_v6, 0.0  ;;  %v813_v35 = vmax.f32 %v1701_v10, 0.0  ;;  %v814_v36 = vmax.f32 %v1705_v14, 0.0 }
 0x1d8   : > { %v815_v37 = vmax.f32 %v1709_v18, 0.0  ;;  %v816_v38 = vmax.f32 %v1713_v22, 0.0  ;;  %v817_v41 = vmax.f32 %v1717_v26, 0.0  ;;  %v818_v42 = vmax.f32 %v1721_v30, 0.0 }
 0x1d9   : > { %v1392_v39 = vpack.c.bf16 %v812_v34, %v811_v33  ;;  %863 = vst [vmem:[%s1968_s4] sm:$0xff] %v811_v33  ;;  %v1397_v40 = vpack.c.bf16 %v814_v36, %v813_v35  ;;  %v819_v44 = vmax.f32 %v1695_v4, 0.0  ;;  %v820_v45 = vmax.f32 %v1699_v8, 0.0 }
 0x1da   : > { %864 = vst [vmem:[%s1968_s4 + $0x8] sm:$0xff] %v812_v34  ;;  %v1402_v43 = vpack.c.bf16 %v816_v38, %v815_v37  ;;  %v1407_v46 = vpack.c.bf16 %v818_v42, %v817_v41  ;;  %v821_v47 = vmax.f32 %v1703_v12, 0.0  ;;  %v822_v48 = vmax.f32 %v1707_v16, 0.0 }
 0x1db   : > { %1393 = vst [vmem:[#allocation2] sm:$0xff] %v1392_v39   ;;  %v1412_v49 = vpack.c.bf16 %v820_v45, %v819_v44  ;;  %v823_v50 = vmax.f32 %v1711_v20, 0.0  ;;  %v824_v51 = vmax.f32 %v1715_v24, 0.0  ;;  %v825_v53 = vmax.f32 %v1719_v28, 0.0 }
 0x1dc   : > { %1436 = vst [vmem:[#allocation2 + $0x8] sm:$0xff] %v1397_v40   ;;  %v1417_v52 = vpack.c.bf16 %v822_v48, %v821_v47  ;;  %v826_v54 = vmax.f32 %v1723_v32, 0.0 }
 0x1dd   : > { %865 = vst [vmem:[%s1968_s4 + $0x10] sm:$0xff] %v813_v35  ;;  %v1422_v55 = vpack.c.bf16 %v824_v51, %v823_v50 }
 0x1de   : > { %866 = vst [vmem:[%s1968_s4 + $0x18] sm:$0xff] %v814_v36  ;;  %v1427_v56 = vpack.c.bf16 %v826_v54, %v825_v53 }
 0x1df   : > { %1437 = vst [vmem:[#allocation2 + $0x10] sm:$0xff] %v1402_v43  }
 0x1e0   : > { %867 = vst [vmem:[%s1968_s4 + $0x20] sm:$0xff] %v815_v37 }
 0x1e1   : > { %868 = vst [vmem:[%s1968_s4 + $0x28] sm:$0xff] %v816_v38 }
 0x1e2   : > { %1438 = vst [vmem:[#allocation2 + $0x18] sm:$0xff] %v1407_v46  }
 0x1e3   : > { %869 = vst [vmem:[%s1968_s4 + $0x30] sm:$0xff] %v817_v41 }
 0x1e4   : > { %870 = vst [vmem:[%s1968_s4 + $0x38] sm:$0xff] %v818_v42 }
 0x1e5   : > { %1439 = vst [vmem:[#allocation2 + $0x20] sm:$0xff] %v1412_v49  }
 0x1e6   : > { %871 = vst [vmem:[%s1968_s4 + $0x40] sm:$0xff] %v819_v44 }
 0x1e7   : > { %872 = vst [vmem:[%s1968_s4 + $0x48] sm:$0xff] %v820_v45 }
 0x1e8   : > { %1440 = vst [vmem:[#allocation2 + $0x28] sm:$0xff] %v1417_v52  }
 0x1e9   : > { %873 = vst [vmem:[%s1968_s4 + $0x50] sm:$0xff] %v821_v47 }
 0x1ea   : > { %874 = vst [vmem:[%s1968_s4 + $0x58] sm:$0xff] %v822_v48 }
 0x1eb   : > { %1441 = vst [vmem:[#allocation2 + $0x30] sm:$0xff] %v1422_v55  }
 0x1ec   : > { %875 = vst [vmem:[%s1968_s4 + $0x60] sm:$0xff] %v823_v50 }
 0x1ed   : > { %876 = vst [vmem:[%s1968_s4 + $0x68] sm:$0xff] %v824_v51 }
 0x1ee   : > { %1442 = vst [vmem:[#allocation2 + $0x38] sm:$0xff] %v1427_v56  }
 0x1ef   : > { %877 = vst [vmem:[%s1968_s4 + $0x70] sm:$0xff] %v825_v53 }
 0x1f0   : > { %878 = vst [vmem:[%s1968_s4 + $0x78] sm:$0xff] %v826_v54 }
 0x1f1 PF: > { %p1310_p7 = scmp.ne.s32.totalorder %s1562_s15, 2 }
 0x1f3   : > { %881 = sbr.rel (%p1310_p7) target bundleno = 808 (0x328), region = 60 }
 0x1f8   : > { %v882_v57 = vlaneseq }
 0x1fa   : > { %v883_v58 = vand.u32 127, %v882_v57 }
 0x1fc   : > { %vm884_vm0 = vcmp.lt.s32.totalorder %v883_v58, 4 }
 0x1fd   : > { %v889_v59 = vsel %vm884_vm0, %v1709_v18, -1e+30  ;;  %v887_v60 = vsel %vm884_vm0, %v1701_v10, -1e+30  ;;  %v885_v61 = vsel %vm884_vm0, %v1693_v2, -1e+30 }
 0x1fe   : > { %909 = vmax.xlane.f32.xlu2 %v889_v59  ;;  %905 = vmax.xlane.f32.xlu1 %v887_v60  ;;  %v890_v62 = vsel %vm884_vm0, %v1713_v22, -1e+30  ;;  %v888_v63 = vsel %vm884_vm0, %v1705_v14, -1e+30  ;;  %v886_v0 = vsel %vm884_vm0, %v1697_v6, -1e+30 }
 0x1ff   : > { %901 = vmax.xlane.f32.xlu0 %v885_v61  ;;  %v893_v1 = vsel %vm884_vm0, %v1695_v4, -1e+30  ;;  %v892_v2 = vsel %vm884_vm0, %v1721_v30, -1e+30  ;;  %v891_v3 = vsel %vm884_vm0, %v1717_v26, -1e+30 }
 0x200   : > { %v896_v5 = vsel %vm884_vm0, %v1707_v16, -1e+30  ;;  %v1813_v6 = vsel %vm884_vm0, %v1703_v12, -1e+30  ;;  %v894_v7 = vsel %vm884_vm0, %v1699_v8, -1e+30 }
 0x201   : > { %v1820_v4 = vsel %vm884_vm0, %v1719_v28, -1e+30  ;;  %v1824_v9 = vsel %vm884_vm0, %v1715_v24, -1e+30  ;;  %v1828_v10 = vsel %vm884_vm0, %v1711_v20, -1e+30 }
 0x202   : > { %v1835_v8 = vsel %vm884_vm0, %v1723_v32, -1e+30 }
 0x206   : > { %911 = vmax.xlane.f32.xlu2 %v890_v62  ;;  %907 = vmax.xlane.f32.xlu1 %v888_v63 }
 0x207   : > { %903 = vmax.xlane.f32.xlu0 %v886_v0 }
 0x20e   : > { %917 = vmax.xlane.f32.xlu2 %v893_v1  ;;  %915 = vmax.xlane.f32.xlu1 %v892_v2 }
 0x20f   : > { %913 = vmax.xlane.f32.xlu0 %v891_v3 }
 0x216   : > { %923 = vmax.xlane.f32.xlu2 %v896_v5  ;;  %921 = vmax.xlane.f32.xlu1 %v1813_v6 }
 0x217   : > { %919 = vmax.xlane.f32.xlu0 %v894_v7 }
 0x21e   : > { %929 = vmax.xlane.f32.xlu2 %v1820_v4  ;;  %927 = vmax.xlane.f32.xlu1 %v1824_v9 }
 0x21f   : > { %925 = vmax.xlane.f32.xlu0 %v1828_v10 }
 0x227   : > { %931 = vmax.xlane.f32.xlu0 %v1835_v8 }
 0x271   : > { %v910_v11 = vpop.xlane.xlu2 %909  ;;  %v906_v12 = vpop.xlane.xlu1 %905 }
 0x272   : > { %v1838_v13 = vsub.f32 %v887_v60, %v906_v12  ;;  %v902_v14 = vpop.xlane.xlu0 %901  ;;  %v1853_v29 = vsub.f32 %v889_v59, %v910_v11 }
 0x273   : > { %v1840_v15 = vsub.f32 %v885_v61, %v902_v14 }
 0x274   : > { %v953_v16 = vmul.f32 1.442695, %v1838_v13  ;;  %v957_v36 = vmul.f32 1.442695, %v1853_v29 }
 0x275   : > { %v949_v17 = vmul.f32 1.442695, %v1840_v15 }
 0x276   : > { %1484 = vpow2.f32 %v953_v16 }
 0x277   : > { %1486 = vpow2.f32 %v949_v17 }
 0x279   : > { %v912_v18 = vpop.xlane.xlu2 %911  ;;  %v908_v19 = vpop.xlane.xlu1 %907 }
 0x27a   : > { %v1844_v20 = vsub.f32 %v890_v62, %v912_v18  ;;  %v1846_v21 = vsub.f32 %v888_v63, %v908_v19  ;;  %v904_v22 = vpop.xlane.xlu0 %903 }
 0x27b   : > { %v1848_v23 = vsub.f32 %v886_v0, %v904_v22 }
 0x27c   : > { %v959_v24 = vmul.f32 1.442695, %v1844_v20  ;;  %v955_v25 = vmul.f32 1.442695, %v1846_v21  ;;  %v1485_v26 = vpop.eup %1484 }
 0x27d   : > { %v951_v27 = vmul.f32 1.442695, %v1848_v23  ;;  %v1487_v28 = vpop.eup %1486  ;;  %985 = vadd.xlane.f32.xlu0 %v1485_v26 }
 0x27e   : > { %1488 = vpow2.f32 %v959_v24  ;;  %981 = vadd.xlane.f32.xlu1 %v1487_v28 }
 0x27f   : > { %1490 = vpow2.f32 %v955_v25 }
 0x280   : > { %1492 = vpow2.f32 %v951_v27 }
 0x281   : > { %v918_v30 = vpop.xlane.xlu2 %917  ;;  %v916_v31 = vpop.xlane.xlu1 %915 }
 0x282   : > { %v1855_v32 = vsub.f32 %v893_v1, %v918_v30  ;;  %v914_v33 = vpop.xlane.xlu0 %913  ;;  %v1862_v40 = vsub.f32 %v892_v2, %v916_v31 }
 0x283   : > { %v1857_v34 = vsub.f32 %v891_v3, %v914_v33 }
 0x284   : > { %v1489_v35 = vpop.eup %1488  ;;  %v965_v37 = vmul.f32 1.442695, %v1855_v32  ;;  %v963_v43 = vmul.f32 1.442695, %v1862_v40 }
 0x285   : > { %v1491_v38 = vpop.eup %1490  ;;  %v961_v39 = vmul.f32 1.442695, %v1857_v34  ;;  %991 = vadd.xlane.f32.xlu0 %v1489_v35 }
 0x286   : > { %v1493_v41 = vpop.eup %1492  ;;  %1494 = vpow2.f32 %v965_v37  ;;  %987 = vadd.xlane.f32.xlu1 %v1491_v38 }
 0x287   : > { %1496 = vpow2.f32 %v961_v39  ;;  %983 = vadd.xlane.f32.xlu2 %v1493_v41 }
 0x288   : > { %1498 = vpow2.f32 %v957_v36 }
 0x289   : > { %v924_v42 = vpop.xlane.xlu2 %923  ;;  %v922_v44 = vpop.xlane.xlu1 %921  ;;  %1500 = vpow2.f32 %v963_v43 }
 0x28a   : > { %v1865_v45 = vsub.f32 %v896_v5, %v924_v42  ;;  %v920_v46 = vpop.xlane.xlu0 %919  ;;  %v1872_v52 = vsub.f32 %v1813_v6, %v922_v44 }
 0x28b   : > { %v1867_v47 = vsub.f32 %v894_v7, %v920_v46 }
 0x28c   : > { %v1495_v48 = vpop.eup %1494  ;;  %v971_v49 = vmul.f32 1.442695, %v1865_v45  ;;  %v969_v55 = vmul.f32 1.442695, %v1872_v52 }
 0x28d   : > { %v1497_v50 = vpop.eup %1496  ;;  %v967_v51 = vmul.f32 1.442695, %v1867_v47  ;;  %997 = vadd.xlane.f32.xlu0 %v1495_v48 }
 0x28e   : > { %v1499_v53 = vpop.eup %1498  ;;  %1502 = vpow2.f32 %v971_v49  ;;  %993 = vadd.xlane.f32.xlu1 %v1497_v50 }
 0x28f   : > { %1504 = vpow2.f32 %v967_v51  ;;  %989 = vadd.xlane.f32.xlu2 %v1499_v53  ;;  %v1501_v58 = vpop.eup %1500 }
 0x290   : > { %1506 = vpow2.f32 %v969_v55 }
 0x291   : > { %v930_v54 = vpop.xlane.xlu2 %929  ;;  %v928_v60 = vpop.xlane.xlu1 %927 }
 0x292   : > { %v1876_v56 = vsub.f32 %v1820_v4, %v930_v54  ;;  %v926_v57 = vpop.xlane.xlu0 %925  ;;  %v1884_v1 = vsub.f32 %v1824_v9, %v928_v60 }
 0x293   : > { %v1879_v59 = vsub.f32 %v1828_v10, %v926_v57 }
 0x294   : > { %v1503_v61 = vpop.eup %1502  ;;  %v977_v62 = vmul.f32 1.442695, %v1876_v56  ;;  %v975_v2 = vmul.f32 1.442695, %v1884_v1 }
 0x295   : > { %v1505_v63 = vpop.eup %1504  ;;  %v973_v0 = vmul.f32 1.442695, %v1879_v59  ;;  %1003 = vadd.xlane.f32.xlu0 %v1503_v61 }
 0x296   : > { %1508 = vpow2.f32 %v977_v62  ;;  %999 = vadd.xlane.f32.xlu1 %v1505_v63  ;;  %v1507_v5 = vpop.eup %1506 }
 0x297   : > { %1510 = vpow2.f32 %v973_v0  ;;  %995 = vadd.xlane.f32.xlu2 %v1501_v58 }
 0x298   : > { %1512 = vpow2.f32 %v975_v2 }
 0x29a   : > { %v932_v3 = vpop.xlane.xlu0 %931 }
 0x29b   : > { %v1888_v6 = vsub.f32 %v1835_v8, %v932_v3 }
 0x29c   : > { %v1509_v7 = vpop.eup %1508 }
 0x29d   : > { %v1511_v4 = vpop.eup %1510  ;;  %v979_v10 = vmul.f32 1.442695, %v1888_v6  ;;  %1009 = vadd.xlane.f32.xlu0 %v1509_v7 }
 0x29e   : > { %1005 = vadd.xlane.f32.xlu1 %v1511_v4  ;;  %v1513_v9 = vpop.eup %1512 }
 0x29f   : > { %1514 = vpow2.f32 %v979_v10  ;;  %1001 = vadd.xlane.f32.xlu2 %v1507_v5 }
 0x2a5   : > { %v1515_v11 = vpop.eup %1514 }
 0x2a6   : > { %1011 = vadd.xlane.f32.xlu1 %v1515_v11 }
 0x2a7   : > { %1007 = vadd.xlane.f32.xlu2 %v1513_v9 }
 0x2f0   : > { %v986_v12 = vpop.xlane.xlu0 %985 }
 0x2f1   : > { %v982_v14 = vpop.xlane.xlu1 %981  ;;  %1516 = vlog2.f32 %v986_v12 }
 0x2f2   : > { %1518 = vlog2.f32 %v982_v14 }
 0x2f7   : > { %v1517_v16 = vpop.eup %1516 }
 0x2f8   : > { %v1519_v8 = vpop.eup %1518  ;;  %v1018_v17 = vmul.f32 0.6931472, %v1517_v16  ;;  %v992_v18 = vpop.xlane.xlu0 %991 }
 0x2f9   : > { %v1014_v19 = vmul.f32 0.6931472, %v1519_v8  ;;  %v988_v22 = vpop.xlane.xlu1 %987  ;;  %1520 = vlog2.f32 %v992_v18 }
 0x2fa   : > { %v984_v24 = vpop.xlane.xlu2 %983  ;;  %v1047_v25 = vsub.f32 %v1838_v13, %v1018_v17  ;;  %1522 = vlog2.f32 %v988_v22 }
 0x2fb   : > { %v1045_v26 = vsub.f32 %v1840_v15, %v1014_v19  ;;  %1524 = vlog2.f32 %v984_v24 }
 0x2fc   : > { %1063 = vst [vmem:[%s1968_s4 + $0x10] sm:$0xff] %v1047_v25 }
 0x2fd   : > { %1061 = vst [vmem:[%s1968_s4] sm:$0xff] %v1045_v26 }
 0x2ff   : > { %v1521_v27 = vpop.eup %1520 }
 0x300   : > { %v1523_v28 = vpop.eup %1522  ;;  %v1024_v30 = vmul.f32 0.6931472, %v1521_v27  ;;  %v998_v31 = vpop.xlane.xlu0 %997 }
 0x301   : > { %v1525_v33 = vpop.eup %1524  ;;  %v1020_v35 = vmul.f32 0.6931472, %v1523_v28  ;;  %v994_v13 = vpop.xlane.xlu1 %993  ;;  %1526 = vlog2.f32 %v998_v31 }
 0x302   : > { %v990_v36 = vpop.xlane.xlu2 %989  ;;  %v1016_v37 = vmul.f32 0.6931472, %v1525_v33  ;;  %v1050_v15 = vsub.f32 %v1844_v20, %v1024_v30 }
 0x303   : > { %1528 = vlog2.f32 %v990_v36  ;;  %v1048_v38 = vsub.f32 %v1846_v21, %v1020_v35 }
 0x304   : > { %1530 = vlog2.f32 %v994_v13  ;;  %v1046_v39 = vsub.f32 %v1848_v23, %v1016_v37  ;;  %1066 = vst [vmem:[%s1968_s4 + $0x28] sm:$0xff] %v1050_v15 }
 0x305   : > { %1064 = vst [vmem:[%s1968_s4 + $0x18] sm:$0xff] %v1048_v38 }
 0x306   : > { %1062 = vst [vmem:[%s1968_s4 + $0x8] sm:$0xff] %v1046_v39 }
 0x307   : > { %v1527_v41 = vpop.eup %1526 }
 0x308   : > { %v1030_v42 = vmul.f32 0.6931472, %v1527_v41  ;;  %v1004_v43 = vpop.xlane.xlu0 %1003 }
 0x309   : > { %v1529_v20 = vpop.eup %1528  ;;  %v1000_v23 = vpop.xlane.xlu1 %999  ;;  %1532 = vlog2.f32 %v1004_v43 }
 0x30a   : > { %v1531_v21 = vpop.eup %1530  ;;  %v1022_v44 = vmul.f32 0.6931472, %v1529_v20  ;;  %v996_v46 = vpop.xlane.xlu2 %995  ;;  %v1053_v49 = vsub.f32 %v1855_v32, %v1030_v42 }
 0x30b   : > { %v1026_v48 = vmul.f32 0.6931472, %v1531_v21  ;;  %1534 = vlog2.f32 %v996_v46 }
 0x30c   : > { %v1049_v50 = vsub.f32 %v1853_v29, %v1022_v44  ;;  %1536 = vlog2.f32 %v1000_v23  ;;  %1069 = vst [vmem:[%s1968_s4 + $0x40] sm:$0xff] %v1053_v49 }
 0x30d   : > { %v1051_v51 = vsub.f32 %v1857_v34, %v1026_v48 }
 0x30e   : > { %1065 = vst [vmem:[%s1968_s4 + $0x20] sm:$0xff] %v1049_v50 }
 0x30f   : > { %1067 = vst [vmem:[%s1968_s4 + $0x30] sm:$0xff] %v1051_v51  ;;  %v1533_v53 = vpop.eup %1532 }
 0x310   : > { %v1036_v54 = vmul.f32 0.6931472, %v1533_v53  ;;  %v1010_v55 = vpop.xlane.xlu0 %1009 }
 0x311   : > { %v1535_v32 = vpop.eup %1534  ;;  %v1006_v34 = vpop.xlane.xlu1 %1005  ;;  %1538 = vlog2.f32 %v1010_v55 }
 0x312   : > { %v1537_v29 = vpop.eup %1536  ;;  %v1028_v57 = vmul.f32 0.6931472, %v1535_v32  ;;  %v1002_v58 = vpop.xlane.xlu2 %1001  ;;  %v1056_v61 = vsub.f32 %v1865_v45, %v1036_v54 }
 0x313   : > { %v1032_v60 = vmul.f32 0.6931472, %v1537_v29  ;;  %1540 = vlog2.f32 %v1002_v58 }
 0x314   : > { %v1052_v62 = vsub.f32 %v1862_v40, %v1028_v57  ;;  %1542 = vlog2.f32 %v1006_v34  ;;  %1072 = vst [vmem:[%s1968_s4 + $0x58] sm:$0xff] %v1056_v61 }
 0x315   : > { %v1054_v63 = vsub.f32 %v1867_v47, %v1032_v60 }
 0x316   : > { %1068 = vst [vmem:[%s1968_s4 + $0x38] sm:$0xff] %v1052_v62 }
 0x317   : > { %1070 = vst [vmem:[%s1968_s4 + $0x48] sm:$0xff] %v1054_v63  ;;  %v1539_v0 = vpop.eup %1538 }
 0x318   : > { %v1042_v2 = vmul.f32 0.6931472, %v1539_v0 }
 0x319   : > { %v1541_v45 = vpop.eup %1540  ;;  %v1012_v7 = vpop.xlane.xlu1 %1011 }
 0x31a   : > { %v1543_v3 = vpop.eup %1542  ;;  %v1034_v40 = vmul.f32 0.6931472, %v1541_v45  ;;  %v1008_v5 = vpop.xlane.xlu2 %1007  ;;  %v1059_v4 = vsub.f32 %v1876_v56, %v1042_v2 }
 0x31b   : > { %v1038_v47 = vmul.f32 0.6931472, %v1543_v3  ;;  %1544 = vlog2.f32 %v1008_v5 }
 0x31c   : > { %v1055_v10 = vsub.f32 %v1872_v52, %v1034_v40  ;;  %1546 = vlog2.f32 %v1012_v7  ;;  %1075 = vst [vmem:[%s1968_s4 + $0x70] sm:$0xff] %v1059_v4 }
 0x31d   : > { %v1057_v9 = vsub.f32 %v1879_v59, %v1038_v47 }
 0x31e   : > { %1071 = vst [vmem:[%s1968_s4 + $0x50] sm:$0xff] %v1055_v10 }
 0x31f   : > { %1073 = vst [vmem:[%s1968_s4 + $0x60] sm:$0xff] %v1057_v9 }
 0x321   : > { %v1545_v11 = vpop.eup %1544 }
 0x322   : > { %v1547_v56 = vpop.eup %1546  ;;  %v1040_v12 = vmul.f32 0.6931472, %v1545_v11 }
 0x323   : > { %v1044_v14 = vmul.f32 0.6931472, %v1547_v56 }
 0x324   : > { %v1058_v52 = vsub.f32 %v1884_v1, %v1040_v12 }
 0x325   : > { %v1060_v59 = vsub.f32 %v1888_v6, %v1044_v14 }
 0x326   : > { %1074 = vst [vmem:[%s1968_s4 + $0x68] sm:$0xff] %v1058_v52 }
 0x327   : > { %1076 = vst [vmem:[%s1968_s4 + $0x78] sm:$0xff] %v1060_v59 }
 0x328 PF: > { %s14_s17 = sadd.s32 1, %s1570_s17   ;;  %s1969_s15 = smov %s1566_s16 }
 0x329   : > { %p11_p8 = scmp.ge.s32.totalorder %s14_s17, 5   ;;  %s1970_s16 = smov %s1972_s18 }
 0x32b   :  { %13 = sbr.rel (!%p11_p8) target bundleno = 2 (0x2), region = 98 }

</bundles_post_ra>
